<compile_context>
chip_gen: v7x
topology: tpu7x:2x2x1
jax: 0.10.0
libtpu: 0.0.40
codegen_flags: <defaults>
</compile_context>

<pallas_src>
import math

import jax
import jax.numpy as jnp
from jax import lax
from jax.experimental import pallas as pl
from jax.experimental.pallas import tpu as pltpu

HIDDEN_DIM = 32
INPUT_DIM = 1
NUM_LAYERS = 2   # kernel below is written for exactly 2 layers
OUTPUT_DIM = 1


def lstm_kernel(x_ref,       # (T, Bp, 1)   time-major input (D_in == 1)
                wihb_ref,    # (1, 8H)      layer-1 input weights (interleaved, 0.5-folded), 0 in layer-2 cols
                bxb_ref,     # (1, 8H)      layer-1 bias, 0 in layer-2 cols
                wbig_ref,    # (2H, 8H)     fused recurrent weights [[whh1|wih2],[0|whh2]]
                b2b_ref,     # (1, 8H)      layer-2 bias, 0 in layer-1 cols
                wlin2_ref,   # (1, 2H)      [0 | w_lin] -> selects the h2 half
                blin_ref,    # (1, OUT)
                out_ref):    # (Bp, OUT)
    T = x_ref.shape[0]
    Bp = x_ref.shape[1]
    H2 = wbig_ref.shape[0]          # 2H (packed [layer1 | layer2] state width)
    H = H2 // 2

    # ---- hoisted weight / bias loads (read once, reused every step) ----
    wihb = wihb_ref[...]
    bxb = bxb_ref[...]
    wbig = wbig_ref[...]
    b2b = b2b_ref[...]
    wlin2 = wlin2_ref[...]
    blin = blin_ref[...]

    # ---- layer-1 input projection for ALL timesteps ----
    # D_in == 1 -> broadcast multiply (pure VPU), hoisted off the recurrence.
    # Layer-2 columns of gx stay exactly 0 (wihb / bxb are 0 there).
    x = x_ref[...]                  # (T, Bp, 1)
    gx = x * wihb + bxb             # (T, Bp, 8H)

    def combined_gates(G, c):
        # G: (Bp, 8H) interleaved pre-activations [i1,i2,f1,f2,g1,g2,o1,o2];
        # i/f/o columns carry a folded 0.5 factor so a SINGLE full-tile tanh
        # gives both tanh(g) and sigmoid(.) = 0.5*tanh(./2) + 0.5 (VPU fixup).
        th = jnp.tanh(G)
        i = 0.5 * th[:, 0 * H:2 * H] + 0.5
        f = 0.5 * th[:, 2 * H:4 * H] + 0.5
        g = th[:, 4 * H:6 * H]
        o = 0.5 * th[:, 6 * H:8 * H] + 0.5
        c_new = f * c + i * g                      # (Bp, 2H) = [c1 | c2]
        h_new = o * jnp.tanh(c_new)                # (Bp, 2H) = [h1 | h2]
        return h_new, c_new

    # prologue (t = 0): h(-1) = 0 so the matmul vanishes; layer-2 columns of
    # gx[0] are 0 (g2-column = 0) so the layer-2 half yields h2 = c2 = 0 exactly.
    h, c = combined_gates(gx[0], jnp.zeros((Bp, H2), jnp.float32))

    # fused steps: at iteration t one MXU pass produces g1(t) (layer-1 cols,
    # needs gx[t]) and g2(t-1) (layer-2 cols, needs b2b) simultaneously.
    # T is small & static: fully unrolled so work across steps can overlap
    # the MXU drain.
    for t in range(1, T + 1):
        G = jnp.dot(h, wbig, preferred_element_type=jnp.float32) + b2b
        if t < T:
            G = G + gx[t]
        # else: the layer-1 half of this last iteration is never used -> skip
        # its input term; its (bounded) garbage gates are discarded below.
        h, c = combined_gates(G, c)

    # final Linear on h2(T-1) (right half of h, left half masked by wlin2):
    # VPU multiply + XLU lane reduction instead of an epilogue MXU pass.
    out_ref[...] = jnp.sum(h * wlin2, axis=-1, keepdims=True) + blin


def lstm_forward(x, kernel_params):
    """x: (B, T, D_in) float32, batch-first (PyTorch convention)."""
    B, T, Din = x.shape
    wihb, bxb, wbig, b2b, wlin2, blin = kernel_params
    OUT = blin.shape[1]

    # time-major + pad batch onto full sublanes (multiple of 8)
    Bp = max(8, ((B + 7) // 8) * 8)
    x_tm = jnp.transpose(x, (1, 0, 2)).astype(jnp.float32)      # (T, B, D_in)
    if Bp != B:
        x_tm = jnp.pad(x_tm, ((0, 0), (0, Bp - B), (0, 0)))     # (T, Bp, D_in)

    full = lambda shape: pl.BlockSpec(shape, lambda i: (0,) * len(shape))

    out = pl.pallas_call(
        lstm_kernel,
        out_shape=jax.ShapeDtypeStruct((Bp, OUT), jnp.float32),
        grid=(1,),
        in_specs=[
            full(x_tm.shape),
            full(wihb.shape),
            full(bxb.shape),
            full(wbig.shape),
            full(b2b.shape),
            full(wlin2.shape),
            full(blin.shape),
        ],
        out_specs=pl.BlockSpec((Bp, OUT), lambda i: (0, 0)),
    )(x_tm, wihb, bxb, wbig, b2b, wlin2, blin)
    # TODO(synk): for large serving batches on v7x, add a leading "parallel"
    # batch grid axis so both TensorCores are used; pointless at B=2 (Bp=8).
    return out[:B]


def init_params(key, input_dim, hidden_dim, output_dim):
    """Raw PyTorch-layout params, uniform(-1/sqrt(H), 1/sqrt(H)) like nn.LSTM."""
    k = 1.0 / math.sqrt(hidden_dim)
    ks = jax.random.split(key, 10)
    u = lambda kk, shape: jax.random.uniform(kk, shape, jnp.float32, -k, k)
    return dict(
        w_ih_l0=u(ks[0], (4 * hidden_dim, input_dim)),
        w_hh_l0=u(ks[1], (4 * hidden_dim, hidden_dim)),
        b_ih_l0=u(ks[2], (4 * hidden_dim,)),
        b_hh_l0=u(ks[3], (4 * hidden_dim,)),
        w_ih_l1=u(ks[4], (4 * hidden_dim, hidden_dim)),
        w_hh_l1=u(ks[5], (4 * hidden_dim, hidden_dim)),
        b_ih_l1=u(ks[6], (4 * hidden_dim,)),
        b_hh_l1=u(ks[7], (4 * hidden_dim,)),
        w_lin=u(ks[8], (output_dim, hidden_dim)),
        b_lin=u(ks[9], (output_dim,)),
    )


def prepare_kernel_params(raw):
    """Build fused / gate-interleaved / 0.5-folded kernel weights."""
    H = raw["w_hh_l0"].shape[1]
    Din = raw["w_ih_l0"].shape[1]
    OUT = raw["w_lin"].shape[0]
    assert Din == 1 and OUT == 1, "kernel packing written for input_dim=output_dim=1"

    def interleave(a, b):
        # a: layer-1 contribution, b: layer-2 contribution, each (..., 4H) in
        # PyTorch [i,f,g,o] column order -> (..., 8H) [i1,i2,f1,f2,g1,g2,o1,o2]
        return jnp.concatenate(
            [blk for k in range(4)
             for blk in (a[..., k * H:(k + 1) * H], b[..., k * H:(k + 1) * H])],
            axis=-1)

    def fold_half_into_ifo(w):
        # sigmoid(x) = 0.5*tanh(x/2) + 0.5 -> pre-scale i/f/o columns by 0.5
        s = jnp.concatenate([jnp.full((2 * H,), 0.5), jnp.full((2 * H,), 0.5),
                             jnp.ones((2 * H,)), jnp.full((2 * H,), 0.5)])
        return w * s.astype(w.dtype)

    wih1 = raw["w_ih_l0"].T          # (Din, 4H)
    whh1 = raw["w_hh_l0"].T          # (H, 4H)
    wih2 = raw["w_ih_l1"].T          # (H, 4H)
    whh2 = raw["w_hh_l1"].T          # (H, 4H)
    b1 = (raw["b_ih_l0"] + raw["b_hh_l0"])[None, :]    # (1, 4H)
    b2 = (raw["b_ih_l1"] + raw["b_hh_l1"])[None, :]    # (1, 4H)
    zH = jnp.zeros((H, 4 * H), jnp.float32)
    z1 = jnp.zeros((1, 4 * H), jnp.float32)

    # W_big rows: top H driven by h1(t)   -> [whh1 | wih2]
    #             bottom H driven by h2(t-1) -> [  0  | whh2]
    wbig = fold_half_into_ifo(
        jnp.concatenate([interleave(whh1, wih2), interleave(zH, whh2)], axis=0))
    wihb = fold_half_into_ifo(interleave(wih1, jnp.zeros_like(wih1)))   # (1, 8H)
    bxb = fold_half_into_ifo(interleave(b1, z1))                        # (1, 8H)
    b2b = fold_half_into_ifo(interleave(z1, b2))                        # (1, 8H)

    wlin2 = jnp.concatenate([jnp.zeros((1, H), jnp.float32),
                             raw["w_lin"]], axis=1)                     # (1, 2H)
    blin = raw["b_lin"][None, :]                                        # (1, OUT)
    return (wihb, bxb, wbig, b2b, wlin2, blin)


def reference_forward(x, raw):
    """Pure-JAX reference on the raw params (same math as torch.nn.LSTM + Linear)."""
    H = raw["w_hh_l0"].shape[1]

    def cell(x_in, h, c, w_ih, w_hh, b_ih, b_hh):
        g = x_in @ w_ih.T + h @ w_hh.T + b_ih + b_hh
        i = jax.nn.sigmoid(g[:, 0 * H:1 * H])
        f = jax.nn.sigmoid(g[:, 1 * H:2 * H])
        gg = jnp.tanh(g[:, 2 * H:3 * H])
        o = jax.nn.sigmoid(g[:, 3 * H:4 * H])
        c_new = f * c + i * gg
        return o * jnp.tanh(c_new), c_new

    def step(carry, xt):
        h1, c1, h2, c2 = carry
        h1, c1 = cell(xt, h1, c1, raw["w_ih_l0"], raw["w_hh_l0"],
                      raw["b_ih_l0"], raw["b_hh_l0"])
        h2, c2 = cell(h1, h2, c2, raw["w_ih_l1"], raw["w_hh_l1"],
                      raw["b_ih_l1"], raw["b_hh_l1"])
        return (h1, c1, h2, c2), None

    B = x.shape[0]
    zeros = jnp.zeros((B, H), jnp.float32)
    (h1, c1, h2, c2), _ = lax.scan(step, (zeros,) * 4,
                                   jnp.transpose(x, (1, 0, 2)))
    return h2 @ raw["w_lin"].T + raw["b_lin"]


if __name__ == "__main__":
    B, T = 2, 8
    key = jax.random.PRNGKey(0)
    k_x, k_p = jax.random.split(key)

    x = jax.random.normal(k_x, (B, T, INPUT_DIM), jnp.float32)
    raw_params = init_params(k_p, INPUT_DIM, HIDDEN_DIM, OUTPUT_DIM)
    kernel_params = prepare_kernel_params(raw_params)

    out = lstm_forward(x, kernel_params)
    out = jax.block_until_ready(out)

    ref = reference_forward(x, raw_params)
    assert out.shape == (B, OUTPUT_DIM)
    assert jnp.allclose(out, ref, atol=1e-5, rtol=1e-5), (out, ref)

    print("KERNEL_OK")
</pallas_src>

<mosaic_0001>
module attributes {stable_mosaic.version = 11 : i64} {
  func.func @lstm_kernel(%arg0: i32, %arg1: memref<8x8x1xf32, #tpu.memory_space<vmem>>, %arg2: memref<1x256xf32, #tpu.memory_space<vmem>>, %arg3: memref<1x256xf32, #tpu.memory_space<vmem>>, %arg4: memref<64x256xf32, #tpu.memory_space<vmem>>, %arg5: memref<1x256xf32, #tpu.memory_space<vmem>>, %arg6: memref<1x64xf32, #tpu.memory_space<vmem>>, %arg7: memref<1x1xf32, #tpu.memory_space<vmem>>, %arg8: memref<8x1xf32, #tpu.memory_space<vmem>>) attributes {dimension_semantics = [#tpu.dimension_semantics<arbitrary>], iteration_bounds = array<i64: 1>, scalar_prefetch = 0 : i64, scratch_operands = 0 : i64, tpu.core_type = #tpu.core_type<tc>, window_params = [{pipeline_mode = #tpu.pipeline_mode<synchronous>, transform_indices = @transform_0, window_bounds = array<i64: 8, 8, 1>}, {pipeline_mode = #tpu.pipeline_mode<synchronous>, transform_indices = @transform_1, window_bounds = array<i64: 1, 256>}, {pipeline_mode = #tpu.pipeline_mode<synchronous>, transform_indices = @transform_2, window_bounds = array<i64: 1, 256>}, {pipeline_mode = #tpu.pipeline_mode<synchronous>, transform_indices = @transform_3, window_bounds = array<i64: 64, 256>}, {pipeline_mode = #tpu.pipeline_mode<synchronous>, transform_indices = @transform_4, window_bounds = array<i64: 1, 256>}, {pipeline_mode = #tpu.pipeline_mode<synchronous>, transform_indices = @transform_5, window_bounds = array<i64: 1, 64>}, {pipeline_mode = #tpu.pipeline_mode<synchronous>, transform_indices = @transform_6, window_bounds = array<i64: 1, 1>}, {pipeline_mode = #tpu.pipeline_mode<synchronous>, transform_indices = @transform_7, window_bounds = array<i64: 8, 1>}]} {
    %c0 = arith.constant 0 : index
    %c0_0 = arith.constant 0 : index
    %0 = vector.load %arg2[%c0, %c0_0] : memref<1x256xf32, #tpu.memory_space<vmem>>, vector<1x256xf32>
    %c0_1 = arith.constant 0 : index
    %c0_2 = arith.constant 0 : index
    %1 = vector.load %arg3[%c0_1, %c0_2] : memref<1x256xf32, #tpu.memory_space<vmem>>, vector<1x256xf32>
    %c0_3 = arith.constant 0 : index
    %c0_4 = arith.constant 0 : index
    %2 = vector.load %arg4[%c0_3, %c0_4] : memref<64x256xf32, #tpu.memory_space<vmem>>, vector<64x256xf32>
    %c0_5 = arith.constant 0 : index
    %c0_6 = arith.constant 0 : index
    %3 = vector.load %arg5[%c0_5, %c0_6] : memref<1x256xf32, #tpu.memory_space<vmem>>, vector<1x256xf32>
    %c0_7 = arith.constant 0 : index
    %c0_8 = arith.constant 0 : index
    %4 = vector.load %arg6[%c0_7, %c0_8] : memref<1x64xf32, #tpu.memory_space<vmem>>, vector<1x64xf32>
    %c0_9 = arith.constant 0 : index
    %c0_10 = arith.constant 0 : index
    %5 = vector.load %arg7[%c0_9, %c0_10] : memref<1x1xf32, #tpu.memory_space<vmem>>, vector<1x1xf32>
    %c0_11 = arith.constant 0 : index
    %c0_12 = arith.constant 0 : index
    %c0_13 = arith.constant 0 : index
    %6 = vector.load %arg1[%c0_11, %c0_12, %c0_13] : memref<8x8x1xf32, #tpu.memory_space<vmem>>, vector<8x8x1xf32>
    %7 = vector.shape_cast %0 : vector<1x256xf32> to vector<1x1x256xf32>
    %8 = vector.broadcast %6 : vector<8x8x1xf32> to vector<8x8x256xf32>
    %9 = vector.broadcast %7 : vector<1x1x256xf32> to vector<8x8x256xf32>
    %10 = arith.mulf %8, %9 : vector<8x8x256xf32>
    %11 = vector.shape_cast %1 : vector<1x256xf32> to vector<1x1x256xf32>
    %12 = vector.broadcast %11 : vector<1x1x256xf32> to vector<8x8x256xf32>
    %13 = arith.addf %10, %12 : vector<8x8x256xf32>
    %14 = vector.extract_strided_slice %13 {offsets = [0, 0, 0], sizes = [1, 8, 256], strides = [1, 1, 1]} : vector<8x8x256xf32> to vector<1x8x256xf32>
    %15 = vector.shape_cast %14 : vector<1x8x256xf32> to vector<8x256xf32>
    %cst = arith.constant 0.000000e+00 : f32
    %16 = vector.broadcast %cst : f32 to vector<8x64xf32>
    %17 = math.tanh %15 : vector<8x256xf32>
    %18 = vector.extract_strided_slice %17 {offsets = [0, 0], sizes = [8, 64], strides = [1, 1]} : vector<8x256xf32> to vector<8x64xf32>
    %cst_14 = arith.constant 5.000000e-01 : f32
    %19 = vector.broadcast %cst_14 : f32 to vector<8x64xf32>
    %20 = arith.mulf %19, %18 : vector<8x64xf32>
    %cst_15 = arith.constant 5.000000e-01 : f32
    %21 = vector.broadcast %cst_15 : f32 to vector<8x64xf32>
    %22 = arith.addf %20, %21 : vector<8x64xf32>
    %23 = vector.extract_strided_slice %17 {offsets = [0, 64], sizes = [8, 64], strides = [1, 1]} : vector<8x256xf32> to vector<8x64xf32>
    %cst_16 = arith.constant 5.000000e-01 : f32
    %24 = vector.broadcast %cst_16 : f32 to vector<8x64xf32>
    %25 = arith.mulf %24, %23 : vector<8x64xf32>
    %cst_17 = arith.constant 5.000000e-01 : f32
    %26 = vector.broadcast %cst_17 : f32 to vector<8x64xf32>
    %27 = arith.addf %25, %26 : vector<8x64xf32>
    %28 = vector.extract_strided_slice %17 {offsets = [0, 128], sizes = [8, 64], strides = [1, 1]} : vector<8x256xf32> to vector<8x64xf32>
    %29 = vector.extract_strided_slice %17 {offsets = [0, 192], sizes = [8, 64], strides = [1, 1]} : vector<8x256xf32> to vector<8x64xf32>
    %cst_18 = arith.constant 5.000000e-01 : f32
    %30 = vector.broadcast %cst_18 : f32 to vector<8x64xf32>
    %31 = arith.mulf %30, %29 : vector<8x64xf32>
    %cst_19 = arith.constant 5.000000e-01 : f32
    %32 = vector.broadcast %cst_19 : f32 to vector<8x64xf32>
    %33 = arith.addf %31, %32 : vector<8x64xf32>
    %34 = arith.mulf %27, %16 : vector<8x64xf32>
    %35 = arith.mulf %22, %28 : vector<8x64xf32>
    %36 = arith.addf %34, %35 : vector<8x64xf32>
    %37 = math.tanh %36 : vector<8x64xf32>
    %38 = arith.mulf %33, %37 : vector<8x64xf32>
    %cst_20 = arith.constant dense<0.000000e+00> : vector<8x256xf32>
    %39 = tpu.matmul %38, %2, %cst_20 {dimension_numbers = #tpu.dot_dimension_numbers<[1], [0], [0], [1], [0, 0, 1, 1], [], []>} : vector<8x64xf32>, vector<64x256xf32>, vector<8x256xf32> -> vector<8x256xf32>
    %40 = vector.broadcast %3 : vector<1x256xf32> to vector<8x256xf32>
    %41 = arith.addf %39, %40 : vector<8x256xf32>
    %42 = vector.extract_strided_slice %13 {offsets = [1, 0, 0], sizes = [1, 8, 256], strides = [1, 1, 1]} : vector<8x8x256xf32> to vector<1x8x256xf32>
    %43 = vector.shape_cast %42 : vector<1x8x256xf32> to vector<8x256xf32>
    %44 = arith.addf %41, %43 : vector<8x256xf32>
    %45 = math.tanh %44 : vector<8x256xf32>
    %46 = vector.extract_strided_slice %45 {offsets = [0, 0], sizes = [8, 64], strides = [1, 1]} : vector<8x256xf32> to vector<8x64xf32>
    %cst_21 = arith.constant 5.000000e-01 : f32
    %47 = vector.broadcast %cst_21 : f32 to vector<8x64xf32>
    %48 = arith.mulf %47, %46 : vector<8x64xf32>
    %cst_22 = arith.constant 5.000000e-01 : f32
    %49 = vector.broadcast %cst_22 : f32 to vector<8x64xf32>
    %50 = arith.addf %48, %49 : vector<8x64xf32>
    %51 = vector.extract_strided_slice %45 {offsets = [0, 64], sizes = [8, 64], strides = [1, 1]} : vector<8x256xf32> to vector<8x64xf32>
    %cst_23 = arith.constant 5.000000e-01 : f32
    %52 = vector.broadcast %cst_23 : f32 to vector<8x64xf32>
    %53 = arith.mulf %52, %51 : vector<8x64xf32>
    %cst_24 = arith.constant 5.000000e-01 : f32
    %54 = vector.broadcast %cst_24 : f32 to vector<8x64xf32>
    %55 = arith.addf %53, %54 : vector<8x64xf32>
    %56 = vector.extract_strided_slice %45 {offsets = [0, 128], sizes = [8, 64], strides = [1, 1]} : vector<8x256xf32> to vector<8x64xf32>
    %57 = vector.extract_strided_slice %45 {offsets = [0, 192], sizes = [8, 64], strides = [1, 1]} : vector<8x256xf32> to vector<8x64xf32>
    %cst_25 = arith.constant 5.000000e-01 : f32
    %58 = vector.broadcast %cst_25 : f32 to vector<8x64xf32>
    %59 = arith.mulf %58, %57 : vector<8x64xf32>
    %cst_26 = arith.constant 5.000000e-01 : f32
    %60 = vector.broadcast %cst_26 : f32 to vector<8x64xf32>
    %61 = arith.addf %59, %60 : vector<8x64xf32>
    %62 = arith.mulf %55, %36 : vector<8x64xf32>
    %63 = arith.mulf %50, %56 : vector<8x64xf32>
    %64 = arith.addf %62, %63 : vector<8x64xf32>
    %65 = math.tanh %64 : vector<8x64xf32>
    %66 = arith.mulf %61, %65 : vector<8x64xf32>
    %cst_27 = arith.constant dense<0.000000e+00> : vector<8x256xf32>
    %67 = tpu.matmul %66, %2, %cst_27 {dimension_numbers = #tpu.dot_dimension_numbers<[1], [0], [0], [1], [0, 0, 1, 1], [], []>} : vector<8x64xf32>, vector<64x256xf32>, vector<8x256xf32> -> vector<8x256xf32>
    %68 = vector.broadcast %3 : vector<1x256xf32> to vector<8x256xf32>
    %69 = arith.addf %67, %68 : vector<8x256xf32>
    %70 = vector.extract_strided_slice %13 {offsets = [2, 0, 0], sizes = [1, 8, 256], strides = [1, 1, 1]} : vector<8x8x256xf32> to vector<1x8x256xf32>
    %71 = vector.shape_cast %70 : vector<1x8x256xf32> to vector<8x256xf32>
    %72 = arith.addf %69, %71 : vector<8x256xf32>
    %73 = math.tanh %72 : vector<8x256xf32>
    %74 = vector.extract_strided_slice %73 {offsets = [0, 0], sizes = [8, 64], strides = [1, 1]} : vector<8x256xf32> to vector<8x64xf32>
    %cst_28 = arith.constant 5.000000e-01 : f32
    %75 = vector.broadcast %cst_28 : f32 to vector<8x64xf32>
    %76 = arith.mulf %75, %74 : vector<8x64xf32>
    %cst_29 = arith.constant 5.000000e-01 : f32
    %77 = vector.broadcast %cst_29 : f32 to vector<8x64xf32>
    %78 = arith.addf %76, %77 : vector<8x64xf32>
    %79 = vector.extract_strided_slice %73 {offsets = [0, 64], sizes = [8, 64], strides = [1, 1]} : vector<8x256xf32> to vector<8x64xf32>
    %cst_30 = arith.constant 5.000000e-01 : f32
    %80 = vector.broadcast %cst_30 : f32 to vector<8x64xf32>
    %81 = arith.mulf %80, %79 : vector<8x64xf32>
    %cst_31 = arith.constant 5.000000e-01 : f32
    %82 = vector.broadcast %cst_31 : f32 to vector<8x64xf32>
    %83 = arith.addf %81, %82 : vector<8x64xf32>
    %84 = vector.extract_strided_slice %73 {offsets = [0, 128], sizes = [8, 64], strides = [1, 1]} : vector<8x256xf32> to vector<8x64xf32>
    %85 = vector.extract_strided_slice %73 {offsets = [0, 192], sizes = [8, 64], strides = [1, 1]} : vector<8x256xf32> to vector<8x64xf32>
    %cst_32 = arith.constant 5.000000e-01 : f32
    %86 = vector.broadcast %cst_32 : f32 to vector<8x64xf32>
    %87 = arith.mulf %86, %85 : vector<8x64xf32>
    %cst_33 = arith.constant 5.000000e-01 : f32
    %88 = vector.broadcast %cst_33 : f32 to vector<8x64xf32>
    %89 = arith.addf %87, %88 : vector<8x64xf32>
    %90 = arith.mulf %83, %64 : vector<8x64xf32>
    %91 = arith.mulf %78, %84 : vector<8x64xf32>
    %92 = arith.addf %90, %91 : vector<8x64xf32>
    %93 = math.tanh %92 : vector<8x64xf32>
    %94 = arith.mulf %89, %93 : vector<8x64xf32>
    %cst_34 = arith.constant dense<0.000000e+00> : vector<8x256xf32>
    %95 = tpu.matmul %94, %2, %cst_34 {dimension_numbers = #tpu.dot_dimension_numbers<[1], [0], [0], [1], [0, 0, 1, 1], [], []>} : vector<8x64xf32>, vector<64x256xf32>, vector<8x256xf32> -> vector<8x256xf32>
    %96 = vector.broadcast %3 : vector<1x256xf32> to vector<8x256xf32>
    %97 = arith.addf %95, %96 : vector<8x256xf32>
    %98 = vector.extract_strided_slice %13 {offsets = [3, 0, 0], sizes = [1, 8, 256], strides = [1, 1, 1]} : vector<8x8x256xf32> to vector<1x8x256xf32>
    %99 = vector.shape_cast %98 : vector<1x8x256xf32> to vector<8x256xf32>
    %100 = arith.addf %97, %99 : vector<8x256xf32>
    %101 = math.tanh %100 : vector<8x256xf32>
    %102 = vector.extract_strided_slice %101 {offsets = [0, 0], sizes = [8, 64], strides = [1, 1]} : vector<8x256xf32> to vector<8x64xf32>
    %cst_35 = arith.constant 5.000000e-01 : f32
    %103 = vector.broadcast %cst_35 : f32 to vector<8x64xf32>
    %104 = arith.mulf %103, %102 : vector<8x64xf32>
    %cst_36 = arith.constant 5.000000e-01 : f32
    %105 = vector.broadcast %cst_36 : f32 to vector<8x64xf32>
    %106 = arith.addf %104, %105 : vector<8x64xf32>
    %107 = vector.extract_strided_slice %101 {offsets = [0, 64], sizes = [8, 64], strides = [1, 1]} : vector<8x256xf32> to vector<8x64xf32>
    %cst_37 = arith.constant 5.000000e-01 : f32
    %108 = vector.broadcast %cst_37 : f32 to vector<8x64xf32>
    %109 = arith.mulf %108, %107 : vector<8x64xf32>
    %cst_38 = arith.constant 5.000000e-01 : f32
    %110 = vector.broadcast %cst_38 : f32 to vector<8x64xf32>
    %111 = arith.addf %109, %110 : vector<8x64xf32>
    %112 = vector.extract_strided_slice %101 {offsets = [0, 128], sizes = [8, 64], strides = [1, 1]} : vector<8x256xf32> to vector<8x64xf32>
    %113 = vector.extract_strided_slice %101 {offsets = [0, 192], sizes = [8, 64], strides = [1, 1]} : vector<8x256xf32> to vector<8x64xf32>
    %cst_39 = arith.constant 5.000000e-01 : f32
    %114 = vector.broadcast %cst_39 : f32 to vector<8x64xf32>
    %115 = arith.mulf %114, %113 : vector<8x64xf32>
    %cst_40 = arith.constant 5.000000e-01 : f32
    %116 = vector.broadcast %cst_40 : f32 to vector<8x64xf32>
    %117 = arith.addf %115, %116 : vector<8x64xf32>
    %118 = arith.mulf %111, %92 : vector<8x64xf32>
    %119 = arith.mulf %106, %112 : vector<8x64xf32>
    %120 = arith.addf %118, %119 : vector<8x64xf32>
    %121 = math.tanh %120 : vector<8x64xf32>
    %122 = arith.mulf %117, %121 : vector<8x64xf32>
    %cst_41 = arith.constant dense<0.000000e+00> : vector<8x256xf32>
    %123 = tpu.matmul %122, %2, %cst_41 {dimension_numbers = #tpu.dot_dimension_numbers<[1], [0], [0], [1], [0, 0, 1, 1], [], []>} : vector<8x64xf32>, vector<64x256xf32>, vector<8x256xf32> -> vector<8x256xf32>
    %124 = vector.broadcast %3 : vector<1x256xf32> to vector<8x256xf32>
    %125 = arith.addf %123, %124 : vector<8x256xf32>
    %126 = vector.extract_strided_slice %13 {offsets = [4, 0, 0], sizes = [1, 8, 256], strides = [1, 1, 1]} : vector<8x8x256xf32> to vector<1x8x256xf32>
    %127 = vector.shape_cast %126 : vector<1x8x256xf32> to vector<8x256xf32>
    %128 = arith.addf %125, %127 : vector<8x256xf32>
    %129 = math.tanh %128 : vector<8x256xf32>
    %130 = vector.extract_strided_slice %129 {offsets = [0, 0], sizes = [8, 64], strides = [1, 1]} : vector<8x256xf32> to vector<8x64xf32>
    %cst_42 = arith.constant 5.000000e-01 : f32
    %131 = vector.broadcast %cst_42 : f32 to vector<8x64xf32>
    %132 = arith.mulf %131, %130 : vector<8x64xf32>
    %cst_43 = arith.constant 5.000000e-01 : f32
    %133 = vector.broadcast %cst_43 : f32 to vector<8x64xf32>
    %134 = arith.addf %132, %133 : vector<8x64xf32>
    %135 = vector.extract_strided_slice %129 {offsets = [0, 64], sizes = [8, 64], strides = [1, 1]} : vector<8x256xf32> to vector<8x64xf32>
    %cst_44 = arith.constant 5.000000e-01 : f32
    %136 = vector.broadcast %cst_44 : f32 to vector<8x64xf32>
    %137 = arith.mulf %136, %135 : vector<8x64xf32>
    %cst_45 = arith.constant 5.000000e-01 : f32
    %138 = vector.broadcast %cst_45 : f32 to vector<8x64xf32>
    %139 = arith.addf %137, %138 : vector<8x64xf32>
    %140 = vector.extract_strided_slice %129 {offsets = [0, 128], sizes = [8, 64], strides = [1, 1]} : vector<8x256xf32> to vector<8x64xf32>
    %141 = vector.extract_strided_slice %129 {offsets = [0, 192], sizes = [8, 64], strides = [1, 1]} : vector<8x256xf32> to vector<8x64xf32>
    %cst_46 = arith.constant 5.000000e-01 : f32
    %142 = vector.broadcast %cst_46 : f32 to vector<8x64xf32>
    %143 = arith.mulf %142, %141 : vector<8x64xf32>
    %cst_47 = arith.constant 5.000000e-01 : f32
    %144 = vector.broadcast %cst_47 : f32 to vector<8x64xf32>
    %145 = arith.addf %143, %144 : vector<8x64xf32>
    %146 = arith.mulf %139, %120 : vector<8x64xf32>
    %147 = arith.mulf %134, %140 : vector<8x64xf32>
    %148 = arith.addf %146, %147 : vector<8x64xf32>
    %149 = math.tanh %148 : vector<8x64xf32>
    %150 = arith.mulf %145, %149 : vector<8x64xf32>
    %cst_48 = arith.constant dense<0.000000e+00> : vector<8x256xf32>
    %151 = tpu.matmul %150, %2, %cst_48 {dimension_numbers = #tpu.dot_dimension_numbers<[1], [0], [0], [1], [0, 0, 1, 1], [], []>} : vector<8x64xf32>, vector<64x256xf32>, vector<8x256xf32> -> vector<8x256xf32>
    %152 = vector.broadcast %3 : vector<1x256xf32> to vector<8x256xf32>
    %153 = arith.addf %151, %152 : vector<8x256xf32>
    %154 = vector.extract_strided_slice %13 {offsets = [5, 0, 0], sizes = [1, 8, 256], strides = [1, 1, 1]} : vector<8x8x256xf32> to vector<1x8x256xf32>
    %155 = vector.shape_cast %154 : vector<1x8x256xf32> to vector<8x256xf32>
    %156 = arith.addf %153, %155 : vector<8x256xf32>
    %157 = math.tanh %156 : vector<8x256xf32>
    %158 = vector.extract_strided_slice %157 {offsets = [0, 0], sizes = [8, 64], strides = [1, 1]} : vector<8x256xf32> to vector<8x64xf32>
    %cst_49 = arith.constant 5.000000e-01 : f32
    %159 = vector.broadcast %cst_49 : f32 to vector<8x64xf32>
    %160 = arith.mulf %159, %158 : vector<8x64xf32>
    %cst_50 = arith.constant 5.000000e-01 : f32
    %161 = vector.broadcast %cst_50 : f32 to vector<8x64xf32>
    %162 = arith.addf %160, %161 : vector<8x64xf32>
    %163 = vector.extract_strided_slice %157 {offsets = [0, 64], sizes = [8, 64], strides = [1, 1]} : vector<8x256xf32> to vector<8x64xf32>
    %cst_51 = arith.constant 5.000000e-01 : f32
    %164 = vector.broadcast %cst_51 : f32 to vector<8x64xf32>
    %165 = arith.mulf %164, %163 : vector<8x64xf32>
    %cst_52 = arith.constant 5.000000e-01 : f32
    %166 = vector.broadcast %cst_52 : f32 to vector<8x64xf32>
    %167 = arith.addf %165, %166 : vector<8x64xf32>
    %168 = vector.extract_strided_slice %157 {offsets = [0, 128], sizes = [8, 64], strides = [1, 1]} : vector<8x256xf32> to vector<8x64xf32>
    %169 = vector.extract_strided_slice %157 {offsets = [0, 192], sizes = [8, 64], strides = [1, 1]} : vector<8x256xf32> to vector<8x64xf32>
    %cst_53 = arith.constant 5.000000e-01 : f32
    %170 = vector.broadcast %cst_53 : f32 to vector<8x64xf32>
    %171 = arith.mulf %170, %169 : vector<8x64xf32>
    %cst_54 = arith.constant 5.000000e-01 : f32
    %172 = vector.broadcast %cst_54 : f32 to vector<8x64xf32>
    %173 = arith.addf %171, %172 : vector<8x64xf32>
    %174 = arith.mulf %167, %148 : vector<8x64xf32>
    %175 = arith.mulf %162, %168 : vector<8x64xf32>
    %176 = arith.addf %174, %175 : vector<8x64xf32>
    %177 = math.tanh %176 : vector<8x64xf32>
    %178 = arith.mulf %173, %177 : vector<8x64xf32>
    %cst_55 = arith.constant dense<0.000000e+00> : vector<8x256xf32>
    %179 = tpu.matmul %178, %2, %cst_55 {dimension_numbers = #tpu.dot_dimension_numbers<[1], [0], [0], [1], [0, 0, 1, 1], [], []>} : vector<8x64xf32>, vector<64x256xf32>, vector<8x256xf32> -> vector<8x256xf32>
    %180 = vector.broadcast %3 : vector<1x256xf32> to vector<8x256xf32>
    %181 = arith.addf %179, %180 : vector<8x256xf32>
    %182 = vector.extract_strided_slice %13 {offsets = [6, 0, 0], sizes = [1, 8, 256], strides = [1, 1, 1]} : vector<8x8x256xf32> to vector<1x8x256xf32>
    %183 = vector.shape_cast %182 : vector<1x8x256xf32> to vector<8x256xf32>
    %184 = arith.addf %181, %183 : vector<8x256xf32>
    %185 = math.tanh %184 : vector<8x256xf32>
    %186 = vector.extract_strided_slice %185 {offsets = [0, 0], sizes = [8, 64], strides = [1, 1]} : vector<8x256xf32> to vector<8x64xf32>
    %cst_56 = arith.constant 5.000000e-01 : f32
    %187 = vector.broadcast %cst_56 : f32 to vector<8x64xf32>
    %188 = arith.mulf %187, %186 : vector<8x64xf32>
    %cst_57 = arith.constant 5.000000e-01 : f32
    %189 = vector.broadcast %cst_57 : f32 to vector<8x64xf32>
    %190 = arith.addf %188, %189 : vector<8x64xf32>
    %191 = vector.extract_strided_slice %185 {offsets = [0, 64], sizes = [8, 64], strides = [1, 1]} : vector<8x256xf32> to vector<8x64xf32>
    %cst_58 = arith.constant 5.000000e-01 : f32
    %192 = vector.broadcast %cst_58 : f32 to vector<8x64xf32>
    %193 = arith.mulf %192, %191 : vector<8x64xf32>
    %cst_59 = arith.constant 5.000000e-01 : f32
    %194 = vector.broadcast %cst_59 : f32 to vector<8x64xf32>
    %195 = arith.addf %193, %194 : vector<8x64xf32>
    %196 = vector.extract_strided_slice %185 {offsets = [0, 128], sizes = [8, 64], strides = [1, 1]} : vector<8x256xf32> to vector<8x64xf32>
    %197 = vector.extract_strided_slice %185 {offsets = [0, 192], sizes = [8, 64], strides = [1, 1]} : vector<8x256xf32> to vector<8x64xf32>
    %cst_60 = arith.constant 5.000000e-01 : f32
    %198 = vector.broadcast %cst_60 : f32 to vector<8x64xf32>
    %199 = arith.mulf %198, %197 : vector<8x64xf32>
    %cst_61 = arith.constant 5.000000e-01 : f32
    %200 = vector.broadcast %cst_61 : f32 to vector<8x64xf32>
    %201 = arith.addf %199, %200 : vector<8x64xf32>
    %202 = arith.mulf %195, %176 : vector<8x64xf32>
    %203 = arith.mulf %190, %196 : vector<8x64xf32>
    %204 = arith.addf %202, %203 : vector<8x64xf32>
    %205 = math.tanh %204 : vector<8x64xf32>
    %206 = arith.mulf %201, %205 : vector<8x64xf32>
    %cst_62 = arith.constant dense<0.000000e+00> : vector<8x256xf32>
    %207 = tpu.matmul %206, %2, %cst_62 {dimension_numbers = #tpu.dot_dimension_numbers<[1], [0], [0], [1], [0, 0, 1, 1], [], []>} : vector<8x64xf32>, vector<64x256xf32>, vector<8x256xf32> -> vector<8x256xf32>
    %208 = vector.broadcast %3 : vector<1x256xf32> to vector<8x256xf32>
    %209 = arith.addf %207, %208 : vector<8x256xf32>
    %210 = vector.extract_strided_slice %13 {offsets = [7, 0, 0], sizes = [1, 8, 256], strides = [1, 1, 1]} : vector<8x8x256xf32> to vector<1x8x256xf32>
    %211 = vector.shape_cast %210 : vector<1x8x256xf32> to vector<8x256xf32>
    %212 = arith.addf %209, %211 : vector<8x256xf32>
    %213 = math.tanh %212 : vector<8x256xf32>
    %214 = vector.extract_strided_slice %213 {offsets = [0, 0], sizes = [8, 64], strides = [1, 1]} : vector<8x256xf32> to vector<8x64xf32>
    %cst_63 = arith.constant 5.000000e-01 : f32
    %215 = vector.broadcast %cst_63 : f32 to vector<8x64xf32>
    %216 = arith.mulf %215, %214 : vector<8x64xf32>
    %cst_64 = arith.constant 5.000000e-01 : f32
    %217 = vector.broadcast %cst_64 : f32 to vector<8x64xf32>
    %218 = arith.addf %216, %217 : vector<8x64xf32>
    %219 = vector.extract_strided_slice %213 {offsets = [0, 64], sizes = [8, 64], strides = [1, 1]} : vector<8x256xf32> to vector<8x64xf32>
    %cst_65 = arith.constant 5.000000e-01 : f32
    %220 = vector.broadcast %cst_65 : f32 to vector<8x64xf32>
    %221 = arith.mulf %220, %219 : vector<8x64xf32>
    %cst_66 = arith.constant 5.000000e-01 : f32
    %222 = vector.broadcast %cst_66 : f32 to vector<8x64xf32>
    %223 = arith.addf %221, %222 : vector<8x64xf32>
    %224 = vector.extract_strided_slice %213 {offsets = [0, 128], sizes = [8, 64], strides = [1, 1]} : vector<8x256xf32> to vector<8x64xf32>
    %225 = vector.extract_strided_slice %213 {offsets = [0, 192], sizes = [8, 64], strides = [1, 1]} : vector<8x256xf32> to vector<8x64xf32>
    %cst_67 = arith.constant 5.000000e-01 : f32
    %226 = vector.broadcast %cst_67 : f32 to vector<8x64xf32>
    %227 = arith.mulf %226, %225 : vector<8x64xf32>
    %cst_68 = arith.constant 5.000000e-01 : f32
    %228 = vector.broadcast %cst_68 : f32 to vector<8x64xf32>
    %229 = arith.addf %227, %228 : vector<8x64xf32>
    %230 = arith.mulf %223, %204 : vector<8x64xf32>
    %231 = arith.mulf %218, %224 : vector<8x64xf32>
    %232 = arith.addf %230, %231 : vector<8x64xf32>
    %233 = math.tanh %232 : vector<8x64xf32>
    %234 = arith.mulf %229, %233 : vector<8x64xf32>
    %cst_69 = arith.constant dense<0.000000e+00> : vector<8x256xf32>
    %235 = tpu.matmul %234, %2, %cst_69 {dimension_numbers = #tpu.dot_dimension_numbers<[1], [0], [0], [1], [0, 0, 1, 1], [], []>} : vector<8x64xf32>, vector<64x256xf32>, vector<8x256xf32> -> vector<8x256xf32>
    %236 = vector.broadcast %3 : vector<1x256xf32> to vector<8x256xf32>
    %237 = arith.addf %235, %236 : vector<8x256xf32>
    %238 = math.tanh %237 : vector<8x256xf32>
    %239 = vector.extract_strided_slice %238 {offsets = [0, 0], sizes = [8, 64], strides = [1, 1]} : vector<8x256xf32> to vector<8x64xf32>
    %cst_70 = arith.constant 5.000000e-01 : f32
    %240 = vector.broadcast %cst_70 : f32 to vector<8x64xf32>
    %241 = arith.mulf %240, %239 : vector<8x64xf32>
    %cst_71 = arith.constant 5.000000e-01 : f32
    %242 = vector.broadcast %cst_71 : f32 to vector<8x64xf32>
    %243 = arith.addf %241, %242 : vector<8x64xf32>
    %244 = vector.extract_strided_slice %238 {offsets = [0, 64], sizes = [8, 64], strides = [1, 1]} : vector<8x256xf32> to vector<8x64xf32>
    %cst_72 = arith.constant 5.000000e-01 : f32
    %245 = vector.broadcast %cst_72 : f32 to vector<8x64xf32>
    %246 = arith.mulf %245, %244 : vector<8x64xf32>
    %cst_73 = arith.constant 5.000000e-01 : f32
    %247 = vector.broadcast %cst_73 : f32 to vector<8x64xf32>
    %248 = arith.addf %246, %247 : vector<8x64xf32>
    %249 = vector.extract_strided_slice %238 {offsets = [0, 128], sizes = [8, 64], strides = [1, 1]} : vector<8x256xf32> to vector<8x64xf32>
    %250 = vector.extract_strided_slice %238 {offsets = [0, 192], sizes = [8, 64], strides = [1, 1]} : vector<8x256xf32> to vector<8x64xf32>
    %cst_74 = arith.constant 5.000000e-01 : f32
    %251 = vector.broadcast %cst_74 : f32 to vector<8x64xf32>
    %252 = arith.mulf %251, %250 : vector<8x64xf32>
    %cst_75 = arith.constant 5.000000e-01 : f32
    %253 = vector.broadcast %cst_75 : f32 to vector<8x64xf32>
    %254 = arith.addf %252, %253 : vector<8x64xf32>
    %255 = arith.mulf %248, %232 : vector<8x64xf32>
    %256 = arith.mulf %243, %249 : vector<8x64xf32>
    %257 = arith.addf %255, %256 : vector<8x64xf32>
    %258 = math.tanh %257 : vector<8x64xf32>
    %259 = arith.mulf %254, %258 : vector<8x64xf32>
    %260 = vector.broadcast %4 : vector<1x64xf32> to vector<8x64xf32>
    %261 = arith.mulf %259, %260 : vector<8x64xf32>
    %cst_76 = arith.constant dense<0.000000e+00> : vector<8xf32>
    %262 = vector.multi_reduction <add>, %261, %cst_76 [1] : vector<8x64xf32> to vector<8xf32>
    %263 = vector.shape_cast %262 : vector<8xf32> to vector<8x1xf32>
    %264 = vector.broadcast %5 : vector<1x1xf32> to vector<8x1xf32>
    %265 = arith.addf %263, %264 : vector<8x1xf32>
    %c0_77 = arith.constant 0 : index
    %c0_78 = arith.constant 0 : index
    %266 = vector.load %arg8[%c0_77, %c0_78] : memref<8x1xf32, #tpu.memory_space<vmem>>, vector<8x1xf32>
    tpu.vector_store %arg8[%c0_77, %c0_78], %265 {strides = array<i32>} : memref<8x1xf32, #tpu.memory_space<vmem>>, vector<8x1xf32>,
    return
  }
  func.func @transform_0(%arg0: i32) -> (i32, i32, i32) {
    %c0_i32 = arith.constant 0 : i32
    %c0_i32_0 = arith.constant 0 : i32
    %c0_i32_1 = arith.constant 0 : i32
    %c0_i32_2 = arith.constant 0 : i32
    return %c0_i32, %c0_i32_0, %c0_i32_1 : i32, i32, i32
  }
  func.func @transform_1(%arg0: i32) -> (i32, i32) {
    %c0_i32 = arith.constant 0 : i32
    %c0_i32_0 = arith.constant 0 : i32
    %c0_i32_1 = arith.constant 0 : i32
    return %c0_i32, %c0_i32_0 : i32, i32
  }
  func.func @transform_2(%arg0: i32) -> (i32, i32) {
    %c0_i32 = arith.constant 0 : i32
    %c0_i32_0 = arith.constant 0 : i32
    %c0_i32_1 = arith.constant 0 : i32
    return %c0_i32, %c0_i32_0 : i32, i32
  }
  func.func @transform_3(%arg0: i32) -> (i32, i32) {
    %c0_i32 = arith.constant 0 : i32
    %c0_i32_0 = arith.constant 0 : i32
    %c0_i32_1 = arith.constant 0 : i32
    return %c0_i32, %c0_i32_0 : i32, i32
  }
  func.func @transform_4(%arg0: i32) -> (i32, i32) {
    %c0_i32 = arith.constant 0 : i32
    %c0_i32_0 = arith.constant 0 : i32
    %c0_i32_1 = arith.constant 0 : i32
    return %c0_i32, %c0_i32_0 : i32, i32
  }
  func.func @transform_5(%arg0: i32) -> (i32, i32) {
    %c0_i32 = arith.constant 0 : i32
    %c0_i32_0 = arith.constant 0 : i32
    %c0_i32_1 = arith.constant 0 : i32
    return %c0_i32, %c0_i32_0 : i32, i32
  }
  func.func @transform_6(%arg0: i32) -> (i32, i32) {
    %c0_i32 = arith.constant 0 : i32
    %c0_i32_0 = arith.constant 0 : i32
    %c0_i32_1 = arith.constant 0 : i32
    return %c0_i32, %c0_i32_0 : i32, i32
  }
  func.func @transform_7(%arg0: i32) -> (i32, i32) {
    %c0_i32 = arith.constant 0 : i32
    %c0_i32_0 = arith.constant 0 : i32
    %c0_i32_1 = arith.constant 0 : i32
    return %c0_i32, %c0_i32_0 : i32, i32
  }
}

</mosaic_0001>

<bundles_post_ra>
// kernel: tpu_custom_call.1
= control target key start
LH: loop header
LB: loop body
LE: loop exit
PB: predicated region body
PF: predicated region fallthrough
CT: control target
= control target key end

     0   :  { %s1474_s0 = inlined_call_operand.vmem [shape: f32[8,8,1], index: 0, kind: input, shape index: {}]   ;;  %s1475_s1 = inlined_call_operand.vmem [shape: f32[1,256], index: 1, kind: input, shape index: {}]   ;;  %s1476_s2 = inlined_call_operand.vmem [shape: f32[1,256], index: 2, kind: input, shape index: {}]   ;;  %s1477_s3 = inlined_call_operand.hbm [shape: f32[64,256], index: 3, kind: input, shape index: {}]   ;;  %s1478_s4 = inlined_call_operand.vmem [shape: f32[1,256], index: 4, kind: input, shape index: {}]   ;;  %s1479_s5 = inlined_call_operand.vmem [shape: f32[1,64], index: 5, kind: input, shape index: {}]   ;;  %s1480_s6 = inlined_call_operand.<no memory space> [shape: f32[1,1], index: 6, kind: input, shape index: {}]   ;;  %s1481_s7 = inlined_call_operand.vmem [shape: f32[8,1], index: 7, kind: output, shape index: {}]  }
   0x1   :  { %v12_v0 = vstv %s1480_s6 }
   0x2   :  { %13 = vst [vmem:[#allocation2] sm:$0x1] %v12_v0 }
   0x3   :  { %14 = vsyncpa [#allocation4], 0  ;;  %s1188_s26 = smov [#allocation3]   ;;  %s1164_s30 = scalar_lea.hbm %s1477_s3, 2048 }
   0x4   :  { %s26_s27 = sshll.u32 %s1188_s26, 4  ;;  %p1165_p0 = scmp.ne.s32.totalorder %s1477_s3, %s1164_s30  ;;  %s27_s27 = int_to_ptr.vmem [resolvable:$true] %s26_s27 }
   0x5   :  { %p1168_p1 = scmp.lt.u32.totalorder %s1164_s30, %s1477_s3 }
   0x7   :  { %p1170_p2 = pnand %p1168_p1, %p1165_p0 }
   0x9   :  { %1173 = shalt.err (!%p1170_p2)
}
   0xa   :  { %s1174_s6 = scalar_lea.vmem %s27_s27, 2048  ;;  %p1179_p4 = scmp.lt.s32.totalorder %s27_s27, %s27_s27 }
   0xb   :  { %p1175_p3 = scmp.ne.s32.totalorder %s27_s27, %s1174_s6  ;;  %p1180_p5 = scmp.lt.s32.totalorder %s1174_s6, %s1174_s6 }
   0xd   :  { %p1181_p6 = por %p1180_p5, %p1179_p4 }
   0xf   :  { %p1182_p7 = pnand %p1181_p6, %p1175_p3 }
  0x11   :  { %1185 = shalt.err (!%p1182_p7)
}
  0x12   :  { %s1189_s12 = smov 256   ;;  %s1190_s13 = smov 16  }
  0x13   :  { %32 = dma.hbm_to_vmem [thread:$0]  %s1477_s3, 2048, %s27_s27, [#allocation4], %s1189_s12, %s1189_s12, %s1190_s13  }
  0x14   :  { %1186 = dma.done.wait [#allocation4], 2048  }
  0x15   :  { %1187 = vsyncadd [#allocation4], 4294965248  ;;  %v1191_v1 = vmov 0   ;;  %v63_v2 = vld [vmem:[%s1474_s0] sm:$0xff]  ;;  %v112_v3 = vlaneseq  ;;  %v45_v23 = vld [vmem:[#allocation3 + $0x8] sm:$0xff]  ;;  %v1193_v30 = vmov 0.0  }
  0x16   :  { %1108 = vset.pattern.permute.xlu0 %v1191_v1  ;;  %1109 = vset.pattern.permute.xlu1 %v1191_v1  ;;  %v42_v7 = vld [vmem:[%s1475_s1] sm:$0x3]  ;;  %s1192_s1 = smov 64   ;;  %v46_v27 = vld [vmem:[#allocation3 + $0x10] sm:$0xff]  ;;  %v49_v28 = vld [vmem:[#allocation3 + $0x28] sm:$0xff]  ;;  %vm194_vm0 = vcmask 523264  }
  0x17   :  { %73 = vperm.xlu0 %1108, %v63_v2   ;;  %v113_v4 = vshrl.u32 %v112_v3, 7  ;;  %v43_v8 = vld [vmem:[%s1476_s2] sm:$0x3]  ;;  %261 = vmatprep.mubr.f32.mxu0 %v1193_v30  ;;  %v50_v34 = vld [vmem:[#allocation3 + $0x30] sm:$0xff]  ;;  %v53_v35 = vld [vmem:[#allocation3 + $0x48] sm:$0xff]  ;;  %vm957_vm1 = vcmask 7168  }
  0x18   :  { %v47_v24 = vld [vmem:[#allocation3 + $0x18] sm:$0xff]  ;;  %v44_v25 = vld [vmem:[#allocation3] sm:$0xff]  ;;  %354 = vmatprep.mubr.f32.mxu1 %v1193_v30  ;;  %v54_v40 = vld [vmem:[#allocation3 + $0x50] sm:$0xff] }
  0x19   :  { %v1252_v5 = vsub.s32 0, %v113_v4  ;;  %v1254_v6 = vsub.s32 1, %v113_v4  ;;  %v1279_v26 = vpack.c.bf16 %v47_v24, %v45_v23  ;;  %v51_v29 = vld [vmem:[#allocation3 + $0x38] sm:$0xff]  ;;  %v1283_v31 = vpack.c.bf16 %v46_v27, %v44_v25  ;;  %v48_v33 = vld [vmem:[#allocation3 + $0x20] sm:$0xff]  ;;  %v57_v41 = vld [vmem:[#allocation3 + $0x68] sm:$0xff] }
  0x1a   :  { %v1285_v32 = vpack.c.bf16 %v51_v29, %v49_v28  ;;  %v55_v36 = vld [vmem:[#allocation3 + $0x58] sm:$0xff]  ;;  %v1290_v37 = vpack.c.bf16 %v50_v34, %v48_v33  ;;  %v52_v39 = vld [vmem:[#allocation3 + $0x40] sm:$0xff]  ;;  %v58_v46 = vld [vmem:[#allocation3 + $0x70] sm:$0xff] }
  0x1b   :  { %v1263_v9 = vrot.slane %v42_v7, %v1252_v5  ;;  %v1266_v10 = vrot.slane %v42_v7, %v1254_v6  ;;  %v1269_v11 = vrot.slane %v43_v8, %v1252_v5  ;;  %v1274_v15 = vrot.slane %v43_v8, %v1254_v6  ;;  %975 = vmatprep.subr.bf16.mxu0 %v1279_v26  ;;  %v59_v42 = vld [vmem:[#allocation3 + $0x78] sm:$0xff]  ;;  %v56_v45 = vld [vmem:[#allocation3 + $0x60] sm:$0xff] }
  0x1c   :  { %991 = vmatprep.subr.bf16.mxu1 %v1279_v26  ;;  %977 = vmatpush1.bf16.msra.mxu0 %v1283_v31  ;;  %v1294_v38 = vpack.c.bf16 %v55_v36, %v53_v35  ;;  %v1298_v43 = vpack.c.bf16 %v54_v40, %v52_v39  ;;  %v1302_v44 = vpack.c.bf16 %v59_v42, %v57_v41  ;;  %v64_v55 = vld [vmem:[%s1474_s0 + $0x8] sm:$0xff]  ;;  %v60_v58 = vld [vmem:[%s1478_s4] sm:$0x3] }
  0x1d   :  { %993 = vmatpush1.bf16.msra.mxu1 %v1283_v31  ;;  %979 = vmatprep.subr.bf16.mxu0 %v1285_v32  ;;  %v1306_v47 = vpack.c.bf16 %v58_v46, %v56_v45  ;;  %v1335_v61 = vrot.slane %v60_v58, %v1252_v5  ;;  %v1338_v62 = vrot.slane %v60_v58, %v1254_v6 }
  0x1e   :  { %995 = vmatprep.subr.bf16.mxu1 %v1285_v32 }
  0x20   :  { %981 = vmatpush1.bf16.msra.mxu0 %v1290_v37 }
  0x21   :  { %997 = vmatpush1.bf16.msra.mxu1 %v1290_v37  ;;  %983 = vmatprep.subr.bf16.mxu0 %v1294_v38 }
  0x22   :  { %999 = vmatprep.subr.bf16.mxu1 %v1294_v38 }
  0x24   :  { %985 = vmatpush1.bf16.msra.mxu0 %v1298_v43 }
  0x25   :  { %1001 = vmatpush1.bf16.msra.mxu1 %v1298_v43  ;;  %987 = vmatprep.subr.bf16.mxu0 %v1302_v44 }
  0x26   :  { %1003 = vmatprep.subr.bf16.mxu1 %v1302_v44 }
  0x28   :  { %989 = vmatpush1.bf16.msra.mxu0 %v1306_v47 }
  0x29   :  { %1005 = vmatpush1.bf16.msra.mxu1 %v1306_v47  ;;  %1007 = vmatprep.subr.bf16.mxu0 %v1279_v26 }
  0x2a   :  { %1023 = vmatprep.subr.bf16.mxu1 %v1279_v26 }
  0x96   :  { %v74_v12 = vpop.permute.xlu0 %73 }
  0x97   :  { %v122_v13 = vmul.f32 %v1263_v9, %v74_v12  ;;  %v123_v14 = vmul.f32 %v1266_v10, %v74_v12 }
  0x99   :  { %v149_v16 = vadd.f32 %v1269_v11, %v122_v13  ;;  %v150_v17 = vadd.f32 %v1274_v15, %v123_v14 }
  0x9b   :  { %1110 = vtanh.f32 %v149_v16  ;;  %v65_v16 = vld [vmem:[%s1474_s0 + $0x10] sm:$0xff] }
  0x9c   :  { %1112 = vtanh.f32 %v150_v17 }
  0xa5   :  { %v1111_v18 = vpop.eup %1110 }
  0xa6   :  { %v167_v19 = vmul.f32 0.5, %v1111_v18  ;;  %v1113_v21 = vpop.eup %1112 }
  0xa7   :  { %v169_v51 = vmul.f32 0.5, %v1113_v21 }
  0xa8   :  { %v168_v20 = vadd.f32 0.5, %v167_v19 }
  0xa9   :  { %v170_v52 = vadd.f32 0.5, %v169_v51 }
  0xaa   :  { %v172_v22 = vmul.f32 %v1113_v21, %v168_v20  ;;  %v171_v48 = vmul.f32 0.0, %v168_v20 }
  0xac   :  { %174 = vrot.lane.b32.xlu0 %v172_v22, %s1192_s1 }
 0x11e   :  { %v175_v49 = vpop.permute.xlu0 %174 }
 0x11f   :  { %v177_v50 = vadd.f32 %v175_v49, %v171_v48 }
 0x121   :  { %1114 = vtanh.f32 %v177_v50 }
 0x12b   :  { %v1115_v53 = vpop.eup %1114 }
 0x12c   :  { %v179_v54 = vmul.f32 %v1115_v53, %v170_v52 }
 0x12e   :  { %192 = vrot.lane.b32.xlu1 %v179_v54, %s1192_s1 }
 0x132   :  { %78 = vperm.xlu1 %1109, %v64_v55  }
 0x1a0   :  { %v193_v56 = vpop.permute.xlu1 %192 }
 0x1a1   :  { %964 = vmatmul.mubr.msk.f32.vlgmr.msra.gmra.mrb[0].mxu0 %vm194_vm0, %v193_v56 }
 0x1a2   :  { %1009 = vmatpush1.bf16.msra.mxu0 %v1283_v31  ;;  %447 = vmatprep.mubr.f32.mxu0 %v1193_v30 }
 0x1a3   :  { %1011 = vmatprep.subr.bf16.mxu0 %v1285_v32 }
 0x1a6   :  { %1013 = vmatpush1.bf16.msra.mxu0 %v1290_v37 }
 0x1a7   :  { %1015 = vmatprep.subr.bf16.mxu0 %v1294_v38 }
 0x1aa   :  { %1017 = vmatpush1.bf16.msra.mxu0 %v1298_v43 }
 0x1ab   :  { %1019 = vmatprep.subr.bf16.mxu0 %v1302_v44 }
 0x1ae   :  { %1021 = vmatpush1.bf16.msra.mxu0 %v1306_v47 }
 0x1af   :  { %1039 = vmatprep.subr.bf16.mxu0 %v1279_v26 }
 0x1b1   :  { %v79_v57 = vpop.permute.xlu1 %78 }
 0x1b2   :  { %v124_v59 = vmul.f32 %v1263_v9, %v79_v57  ;;  %v125_v60 = vmul.f32 %v1266_v10, %v79_v57 }
 0x1b4   :  { %v151_v63 = vadd.f32 %v1269_v11, %v124_v59  ;;  %v152_v1 = vadd.f32 %v1274_v15, %v125_v60 }
 0x274   :  { %v263_v0 = vpop.f32.mrb[0].mxu0 }
 0x275   :  { %v264_v2 = vadd.f32 %v263_v0, %v1335_v61  ;;  %v265_v3 = vpop.f32.mrb[1].mxu0 }
 0x276   :  { %v266_v4 = vadd.f32 %v265_v3, %v1338_v62 }
 0x277   :  { %v268_v7 = vadd.f32 %v264_v2, %v151_v63 }
 0x278   :  { %v269_v8 = vadd.f32 %v266_v4, %v152_v1 }
 0x279   :  { %1116 = vtanh.f32 %v268_v7 }
 0x27a   :  { %1118 = vtanh.f32 %v269_v8 }
 0x283   :  { %v1117_v12 = vpop.eup %1116 }
 0x284   :  { %v272_v5 = vmul.f32 0.5, %v1117_v12  ;;  %v1119_v14 = vpop.eup %1118 }
 0x285   :  { %v274_v20 = vmul.f32 0.5, %v1119_v14 }
 0x286   :  { %v273_v13 = vadd.f32 0.5, %v272_v5 }
 0x287   :  { %v275_v21 = vadd.f32 0.5, %v274_v20 }
 0x288   :  { %v277_v6 = vmul.f32 %v1119_v14, %v273_v13  ;;  %v276_v17 = vmul.f32 %v273_v13, %v177_v50  ;;  %v66_v50 = vld [vmem:[%s1474_s0 + $0x18] sm:$0xff] }
 0x28a   :  { %279 = vrot.lane.b32.xlu0 %v277_v6, %s1192_s1 }
 0x28e   :  { %83 = vperm.xlu0 %1108, %v65_v16  }
 0x2fc   :  { %v280_v18 = vpop.permute.xlu0 %279 }
 0x2fd   :  { %v282_v19 = vadd.f32 %v280_v18, %v276_v17  ;;  %v67_v17 = vld [vmem:[%s1474_s0 + $0x20] sm:$0xff] }
 0x2ff   :  { %1120 = vtanh.f32 %v282_v19 }
 0x309   :  { %v1121_v22 = vpop.eup %1120 }
 0x30a   :  { %v284_v23 = vmul.f32 %v1121_v22, %v275_v21 }
 0x30c   :  { %286 = vrot.lane.b32.xlu1 %v284_v23, %s1192_s1 }
 0x30d   :  { %v84_v25 = vpop.permute.xlu0 %83 }
 0x30e   :  { %v126_v27 = vmul.f32 %v1263_v9, %v84_v25  ;;  %v127_v28 = vmul.f32 %v1266_v10, %v84_v25 }
 0x310   :  { %v153_v33 = vadd.f32 %v1269_v11, %v126_v27  ;;  %v154_v39 = vadd.f32 %v1274_v15, %v127_v28 }
 0x37e   :  { %v287_v24 = vpop.permute.xlu1 %286 }
 0x37f   :  { %965 = vmatmul.mubr.msk.f32.vlgmr.msra.gmra.mrb[0].mxu1 %vm194_vm0, %v287_v24 }
 0x380   :  { %1025 = vmatpush1.bf16.msra.mxu1 %v1283_v31  ;;  %540 = vmatprep.mubr.f32.mxu1 %v1193_v30 }
 0x381   :  { %1027 = vmatprep.subr.bf16.mxu1 %v1285_v32 }
 0x384   :  { %1029 = vmatpush1.bf16.msra.mxu1 %v1290_v37 }
 0x385   :  { %1031 = vmatprep.subr.bf16.mxu1 %v1294_v38 }
 0x388   :  { %1033 = vmatpush1.bf16.msra.mxu1 %v1298_v43 }
 0x389   :  { %1035 = vmatprep.subr.bf16.mxu1 %v1302_v44 }
 0x38c   :  { %1037 = vmatpush1.bf16.msra.mxu1 %v1306_v47 }
 0x38d   :  { %1055 = vmatprep.subr.bf16.mxu1 %v1279_v26 }
 0x452   :  { %v356_v29 = vpop.f32.mrb[0].mxu1 }
 0x453   :  { %v357_v34 = vadd.f32 %v356_v29, %v1335_v61  ;;  %v358_v35 = vpop.f32.mrb[1].mxu1 }
 0x454   :  { %v359_v36 = vadd.f32 %v358_v35, %v1338_v62 }
 0x455   :  { %v361_v40 = vadd.f32 %v357_v34, %v153_v33 }
 0x456   :  { %v362_v41 = vadd.f32 %v359_v36, %v154_v39 }
 0x457   :  { %1122 = vtanh.f32 %v361_v40 }
 0x458   :  { %1124 = vtanh.f32 %v362_v41 }
 0x461   :  { %v1123_v42 = vpop.eup %1122 }
 0x462   :  { %v365_v45 = vmul.f32 0.5, %v1123_v42  ;;  %v1125_v48 = vpop.eup %1124 }
 0x463   :  { %v367_v54 = vmul.f32 0.5, %v1125_v48 }
 0x464   :  { %v366_v46 = vadd.f32 0.5, %v365_v45 }
 0x465   :  { %v368_v55 = vadd.f32 0.5, %v367_v54 }
 0x466   :  { %v370_v49 = vmul.f32 %v1125_v48, %v366_v46  ;;  %v369_v51 = vmul.f32 %v366_v46, %v282_v19 }
 0x468   :  { %372 = vrot.lane.b32.xlu1 %v370_v49, %s1192_s1 }
 0x46c   :  { %88 = vperm.xlu1 %1109, %v66_v50   ;;  %v68_v50 = vld [vmem:[%s1474_s0 + $0x28] sm:$0xff] }
 0x4da   :  { %v373_v52 = vpop.permute.xlu1 %372 }
 0x4db   :  { %v375_v53 = vadd.f32 %v373_v52, %v369_v51 }
 0x4dd   :  { %1126 = vtanh.f32 %v375_v53 }
 0x4e7   :  { %v1127_v56 = vpop.eup %1126 }
 0x4e8   :  { %v377_v57 = vmul.f32 %v1127_v56, %v368_v55 }
 0x4ea   :  { %379 = vrot.lane.b32.xlu0 %v377_v57, %s1192_s1 }
 0x4eb   :  { %v89_v59 = vpop.permute.xlu1 %88 }
 0x4ec   :  { %v128_v60 = vmul.f32 %v1263_v9, %v89_v59  ;;  %v129_v63 = vmul.f32 %v1266_v10, %v89_v59 }
 0x4ee   :  { %v155_v1 = vadd.f32 %v1269_v11, %v128_v60  ;;  %v156_v7 = vadd.f32 %v1274_v15, %v129_v63 }
 0x55c   :  { %v380_v58 = vpop.permute.xlu0 %379 }
 0x55d   :  { %966 = vmatmul.mubr.msk.f32.vlgmr.msra.gmra.mrb[2].mxu0 %vm194_vm0, %v380_v58 }
 0x55e   :  { %1041 = vmatpush1.bf16.msra.mxu0 %v1283_v31  ;;  %633 = vmatprep.mubr.f32.mxu0 %v1193_v30 }
 0x55f   :  { %1043 = vmatprep.subr.bf16.mxu0 %v1285_v32 }
 0x562   :  { %1045 = vmatpush1.bf16.msra.mxu0 %v1290_v37 }
 0x563   :  { %1047 = vmatprep.subr.bf16.mxu0 %v1294_v38 }
 0x566   :  { %1049 = vmatpush1.bf16.msra.mxu0 %v1298_v43 }
 0x567   :  { %1051 = vmatprep.subr.bf16.mxu0 %v1302_v44 }
 0x56a   :  { %1053 = vmatpush1.bf16.msra.mxu0 %v1306_v47 }
 0x56b   :  { %1071 = vmatprep.subr.bf16.mxu0 %v1279_v26 }
 0x630   :  { %v449_v0 = vpop.f32.mrb[2].mxu0 }
 0x631   :  { %v450_v2 = vadd.f32 %v449_v0, %v1335_v61  ;;  %v451_v3 = vpop.f32.mrb[3].mxu0 }
 0x632   :  { %v452_v4 = vadd.f32 %v451_v3, %v1338_v62 }
 0x633   :  { %v454_v8 = vadd.f32 %v450_v2, %v155_v1 }
 0x634   :  { %v455_v12 = vadd.f32 %v452_v4, %v156_v7 }
 0x635   :  { %1128 = vtanh.f32 %v454_v8 }
 0x636   :  { %1130 = vtanh.f32 %v455_v12 }
 0x63f   :  { %v1129_v5 = vpop.eup %1128 }
 0x640   :  { %v458_v13 = vmul.f32 0.5, %v1129_v5  ;;  %v1131_v6 = vpop.eup %1130 }
 0x641   :  { %v460_v21 = vmul.f32 0.5, %v1131_v6 }
 0x642   :  { %v459_v14 = vadd.f32 0.5, %v458_v13 }
 0x643   :  { %v461_v22 = vadd.f32 0.5, %v460_v21 }
 0x644   :  { %v463_v16 = vmul.f32 %v1131_v6, %v459_v14  ;;  %v462_v18 = vmul.f32 %v459_v14, %v375_v53 }
 0x646   :  { %465 = vrot.lane.b32.xlu0 %v463_v16, %s1192_s1 }
 0x64a   :  { %93 = vperm.xlu0 %1108, %v67_v17   ;;  %v69_v17 = vld [vmem:[%s1474_s0 + $0x30] sm:$0xff] }
 0x6b8   :  { %v466_v19 = vpop.permute.xlu0 %465 }
 0x6b9   :  { %v468_v20 = vadd.f32 %v466_v19, %v462_v18 }
 0x6bb   :  { %1132 = vtanh.f32 %v468_v20 }
 0x6c5   :  { %v1133_v23 = vpop.eup %1132 }
 0x6c6   :  { %v470_v24 = vmul.f32 %v1133_v23, %v461_v22 }
 0x6c8   :  { %472 = vrot.lane.b32.xlu1 %v470_v24, %s1192_s1 }
 0x6c9   :  { %v94_v27 = vpop.permute.xlu0 %93 }
 0x6ca   :  { %v130_v28 = vmul.f32 %v1263_v9, %v94_v27  ;;  %v131_v29 = vmul.f32 %v1266_v10, %v94_v27 }
 0x6cc   :  { %v157_v34 = vadd.f32 %v1269_v11, %v130_v28  ;;  %v158_v40 = vadd.f32 %v1274_v15, %v131_v29 }
 0x73a   :  { %v473_v25 = vpop.permute.xlu1 %472 }
 0x73b   :  { %967 = vmatmul.mubr.msk.f32.vlgmr.msra.gmra.mrb[2].mxu1 %vm194_vm0, %v473_v25 }
 0x73c   :  { %1057 = vmatpush1.bf16.msra.mxu1 %v1283_v31  ;;  %726 = vmatprep.mubr.f32.mxu1 %v1193_v30 }
 0x73d   :  { %1059 = vmatprep.subr.bf16.mxu1 %v1285_v32 }
 0x740   :  { %1061 = vmatpush1.bf16.msra.mxu1 %v1290_v37 }
 0x741   :  { %1063 = vmatprep.subr.bf16.mxu1 %v1294_v38 }
 0x744   :  { %1065 = vmatpush1.bf16.msra.mxu1 %v1298_v43 }
 0x745   :  { %1067 = vmatprep.subr.bf16.mxu1 %v1302_v44 }
 0x748   :  { %1069 = vmatpush1.bf16.msra.mxu1 %v1306_v47 }
 0x749   :  { %1087 = vmatprep.subr.bf16.mxu1 %v1279_v26 }
 0x80e   :  { %v542_v33 = vpop.f32.mrb[2].mxu1 }
 0x80f   :  { %v543_v35 = vadd.f32 %v542_v33, %v1335_v61  ;;  %v544_v36 = vpop.f32.mrb[3].mxu1 }
 0x810   :  { %v545_v39 = vadd.f32 %v544_v36, %v1338_v62 }
 0x811   :  { %v547_v41 = vadd.f32 %v543_v35, %v157_v34 }
 0x812   :  { %v548_v42 = vadd.f32 %v545_v39, %v158_v40  ;;  %v70_v40 = vld [vmem:[%s1474_s0 + $0x38] sm:$0xff] }
 0x813   :  { %1134 = vtanh.f32 %v547_v41 }
 0x814   :  { %1136 = vtanh.f32 %v548_v42 }
 0x81d   :  { %v1135_v26 = vpop.eup %1134 }
 0x81e   :  { %v551_v45 = vmul.f32 0.5, %v1135_v26  ;;  %v1137_v48 = vpop.eup %1136 }
 0x81f   :  { %v553_v54 = vmul.f32 0.5, %v1137_v48 }
 0x820   :  { %v552_v46 = vadd.f32 0.5, %v551_v45 }
 0x821   :  { %v554_v55 = vadd.f32 0.5, %v553_v54 }
 0x822   :  { %v556_v49 = vmul.f32 %v1137_v48, %v552_v46  ;;  %v555_v51 = vmul.f32 %v552_v46, %v468_v20 }
 0x824   :  { %558 = vrot.lane.b32.xlu1 %v556_v49, %s1192_s1 }
 0x828   :  { %98 = vperm.xlu1 %1109, %v68_v50  }
 0x896   :  { %v559_v52 = vpop.permute.xlu1 %558 }
 0x897   :  { %v561_v53 = vadd.f32 %v559_v52, %v555_v51 }
 0x899   :  { %1138 = vtanh.f32 %v561_v53 }
 0x8a3   :  { %v1139_v56 = vpop.eup %1138 }
 0x8a4   :  { %v563_v57 = vmul.f32 %v1139_v56, %v554_v55 }
 0x8a6   :  { %565 = vrot.lane.b32.xlu0 %v563_v57, %s1192_s1 }
 0x8a7   :  { %v99_v59 = vpop.permute.xlu1 %98 }
 0x8a8   :  { %v132_v60 = vmul.f32 %v1263_v9, %v99_v59  ;;  %v133_v63 = vmul.f32 %v1266_v10, %v99_v59 }
 0x8aa   :  { %v159_v1 = vadd.f32 %v1269_v11, %v132_v60  ;;  %v160_v7 = vadd.f32 %v1274_v15, %v133_v63 }
 0x918   :  { %v566_v58 = vpop.permute.xlu0 %565 }
 0x919   :  { %968 = vmatmul.mubr.msk.f32.vlgmr.msra.gmra.mrb[4].mxu0 %vm194_vm0, %v566_v58 }
 0x91a   :  { %1073 = vmatpush1.bf16.msra.mxu0 %v1283_v31  ;;  %819 = vmatprep.mubr.f32.mxu0 %v1193_v30 }
 0x91b   :  { %1075 = vmatprep.subr.bf16.mxu0 %v1285_v32 }
 0x91e   :  { %1077 = vmatpush1.bf16.msra.mxu0 %v1290_v37 }
 0x91f   :  { %1079 = vmatprep.subr.bf16.mxu0 %v1294_v38 }
 0x922   :  { %1081 = vmatpush1.bf16.msra.mxu0 %v1298_v43 }
 0x923   :  { %1083 = vmatprep.subr.bf16.mxu0 %v1302_v44 }
 0x926   :  { %1085 = vmatpush1.bf16.msra.mxu0 %v1306_v47 }
 0x9ec   :  { %v635_v0 = vpop.f32.mrb[4].mxu0 }
 0x9ed   :  { %v636_v2 = vadd.f32 %v635_v0, %v1335_v61  ;;  %v637_v3 = vpop.f32.mrb[5].mxu0 }
 0x9ee   :  { %v638_v4 = vadd.f32 %v637_v3, %v1338_v62 }
 0x9ef   :  { %v640_v8 = vadd.f32 %v636_v2, %v159_v1 }
 0x9f0   :  { %v641_v12 = vadd.f32 %v638_v4, %v160_v7 }
 0x9f1   :  { %1140 = vtanh.f32 %v640_v8 }
 0x9f2   :  { %1142 = vtanh.f32 %v641_v12 }
 0x9fb   :  { %v1141_v5 = vpop.eup %1140 }
 0x9fc   :  { %v644_v13 = vmul.f32 0.5, %v1141_v5  ;;  %v1143_v6 = vpop.eup %1142 }
 0x9fd   :  { %v646_v21 = vmul.f32 0.5, %v1143_v6 }
 0x9fe   :  { %v645_v14 = vadd.f32 0.5, %v644_v13  ;;  %v972_v13 = vld [vmem:[%s1479_s5] ss:$0 sm:$0xff] }
 0x9ff   :  { %v647_v22 = vadd.f32 0.5, %v646_v21 }
 0xa00   :  { %v649_v16 = vmul.f32 %v1143_v6, %v645_v14  ;;  %v648_v18 = vmul.f32 %v645_v14, %v561_v53 }
 0xa02   :  { %651 = vrot.lane.b32.xlu0 %v649_v16, %s1192_s1 }
 0xa06   :  { %103 = vperm.xlu0 %1108, %v69_v17  }
 0xa74   :  { %v652_v19 = vpop.permute.xlu0 %651 }
 0xa75   :  { %v654_v20 = vadd.f32 %v652_v19, %v648_v18 }
 0xa77   :  { %1144 = vtanh.f32 %v654_v20 }
 0xa81   :  { %v1145_v23 = vpop.eup %1144 }
 0xa82   :  { %v656_v24 = vmul.f32 %v1145_v23, %v647_v22 }
 0xa84   :  { %658 = vrot.lane.b32.xlu1 %v656_v24, %s1192_s1 }
 0xa85   :  { %v104_v27 = vpop.permute.xlu0 %103 }
 0xa86   :  { %v134_v28 = vmul.f32 %v1263_v9, %v104_v27  ;;  %v135_v29 = vmul.f32 %v1266_v10, %v104_v27 }
 0xaf6   :  { %v659_v25 = vpop.permute.xlu1 %658 }
 0xaf7   :  { %969 = vmatmul.mubr.msk.f32.vlgmr.msra.gmra.mrb[4].mxu1 %vm194_vm0, %v659_v25 }
 0xaf8   :  { %1089 = vmatpush1.bf16.msra.mxu1 %v1283_v31  ;;  %912 = vmatprep.mubr.f32.mxu1 %v1193_v30  ;;  %v161_v30 = vadd.f32 %v1269_v11, %v134_v28 }
 0xaf9   :  { %1091 = vmatprep.subr.bf16.mxu1 %v1285_v32 }
 0xafc   :  { %1093 = vmatpush1.bf16.msra.mxu1 %v1290_v37 }
 0xafd   :  { %1095 = vmatprep.subr.bf16.mxu1 %v1294_v38  ;;  %v162_v38 = vadd.f32 %v1274_v15, %v135_v29 }
 0xb00   :  { %1097 = vmatpush1.bf16.msra.mxu1 %v1298_v43 }
 0xb01   :  { %1099 = vmatprep.subr.bf16.mxu1 %v1302_v44 }
 0xb04   :  { %1101 = vmatpush1.bf16.msra.mxu1 %v1306_v47 }
 0xbca   :  { %v728_v31 = vpop.f32.mrb[4].mxu1 }
 0xbcb   :  { %v729_v32 = vadd.f32 %v728_v31, %v1335_v61  ;;  %v730_v33 = vpop.f32.mrb[5].mxu1 }
 0xbcc   :  { %v731_v37 = vadd.f32 %v730_v33, %v1338_v62  ;;  %v973_v33 = vld [vmem:[#allocation2] ss:$0 sm:$0xff] }
 0xbcd   :  { %v733_v43 = vadd.f32 %v729_v32, %v161_v30 }
 0xbce   :  { %v734_v44 = vadd.f32 %v731_v37, %v162_v38 }
 0xbcf   :  { %1146 = vtanh.f32 %v733_v43 }
 0xbd0   :  { %1148 = vtanh.f32 %v734_v44 }
 0xbd9   :  { %v1147_v47 = vpop.eup %1146 }
 0xbda   :  { %v737_v34 = vmul.f32 0.5, %v1147_v47  ;;  %v1149_v36 = vpop.eup %1148 }
 0xbdb   :  { %v739_v45 = vmul.f32 0.5, %v1149_v36 }
 0xbdc   :  { %v738_v35 = vadd.f32 0.5, %v737_v34 }
 0xbdd   :  { %v740_v46 = vadd.f32 0.5, %v739_v45 }
 0xbde   :  { %v742_v39 = vmul.f32 %v1149_v36, %v738_v35  ;;  %v741_v41 = vmul.f32 %v738_v35, %v654_v20 }
 0xbe0   :  { %744 = vrot.lane.b32.xlu1 %v742_v39, %s1192_s1 }
 0xbe4   :  { %108 = vperm.xlu1 %1109, %v70_v40  }
 0xc52   :  { %v745_v42 = vpop.permute.xlu1 %744 }
 0xc53   :  { %v747_v26 = vadd.f32 %v745_v42, %v741_v41 }
 0xc55   :  { %1150 = vtanh.f32 %v747_v26 }
 0xc5f   :  { %v1151_v48 = vpop.eup %1150 }
 0xc60   :  { %v749_v49 = vmul.f32 %v1151_v48, %v740_v46 }
 0xc62   :  { %751 = vrot.lane.b32.xlu0 %v749_v49, %s1192_s1 }
 0xc63   :  { %v109_v51 = vpop.permute.xlu1 %108 }
 0xc64   :  { %v136_v52 = vmul.f32 %v1263_v9, %v109_v51  ;;  %v137_v53 = vmul.f32 %v1266_v10, %v109_v51 }
 0xc66   :  { %v163_v55 = vadd.f32 %v1269_v11, %v136_v52  ;;  %v164_v59 = vadd.f32 %v1274_v15, %v137_v53 }
 0xcd4   :  { %v752_v50 = vpop.permute.xlu0 %751 }
 0xcd5   :  { %970 = vmatmul.mubr.msk.f32.vlgmr.msra.gmra.mrb[6].mxu0 %vm194_vm0, %v752_v50 }
 0xda8   :  { %v821_v54 = vpop.f32.mrb[6].mxu0 }
 0xda9   :  { %v822_v56 = vadd.f32 %v821_v54, %v1335_v61  ;;  %v823_v57 = vpop.f32.mrb[7].mxu0 }
 0xdaa   :  { %v824_v58 = vadd.f32 %v823_v57, %v1338_v62 }
 0xdab   :  { %v826_v60 = vadd.f32 %v822_v56, %v163_v55 }
 0xdac   :  { %v827_v63 = vadd.f32 %v824_v58, %v164_v59 }
 0xdad   :  { %1152 = vtanh.f32 %v826_v60 }
 0xdae   :  { %1154 = vtanh.f32 %v827_v63 }
 0xdb7   :  { %v1153_v0 = vpop.eup %1152 }
 0xdb8   :  { %v830_v1 = vmul.f32 0.5, %v1153_v0  ;;  %v1155_v9 = vpop.eup %1154 }
 0xdb9   :  { %v832_v7 = vmul.f32 0.5, %v1155_v9 }
 0xdba   :  { %v831_v2 = vadd.f32 0.5, %v830_v1 }
 0xdbb   :  { %v833_v8 = vadd.f32 0.5, %v832_v7 }
 0xdbc   :  { %v835_v3 = vmul.f32 %v1155_v9, %v831_v2  ;;  %v834_v10 = vmul.f32 %v831_v2, %v747_v26 }
 0xdbe   :  { %837 = vrot.lane.b32.xlu0 %v835_v3, %s1192_s1 }
 0xe30   :  { %v838_v11 = vpop.permute.xlu0 %837 }
 0xe31   :  { %v840_v4 = vadd.f32 %v838_v11, %v834_v10 }
 0xe33   :  { %1156 = vtanh.f32 %v840_v4 }
 0xe3d   :  { %v1157_v12 = vpop.eup %1156 }
 0xe3e   :  { %v842_v5 = vmul.f32 %v1157_v12, %v833_v8 }
 0xe40   :  { %844 = vrot.lane.b32.xlu1 %v842_v5, %s1192_s1 }
 0xe44   :  { %939 = vrot.lane.b32.xlu1 %v972_v13, %s1192_s1 }
 0xeb2   :  { %v845_v15 = vpop.permute.xlu1 %844 }
 0xeb3   :  { %971 = vmatmul.mubr.msk.f32.vlgmr.msra.gmra.mrb[6].mxu1 %vm194_vm0, %v845_v15 }
 0xf86   :  { %v914_v14 = vpop.f32.mrb[6].mxu1 }
 0xf87   :  { %v915_v6 = vadd.f32 %v914_v14, %v1335_v61  ;;  %v916_v16 = vpop.f32.mrb[7].mxu1  ;;  %v940_v61 = vpop.permute.xlu1 %939 }
 0xf88   :  { %v917_v17 = vadd.f32 %v916_v16, %v1338_v62 }
 0xf89   :  { %1158 = vtanh.f32 %v915_v6 }
 0xf8a   :  { %1160 = vtanh.f32 %v917_v17 }
 0xf93   :  { %v1159_v18 = vpop.eup %1158 }
 0xf94   :  { %v921_v19 = vmul.f32 0.5, %v1159_v18  ;;  %v1161_v21 = vpop.eup %1160 }
 0xf95   :  { %v923_v27 = vmul.f32 0.5, %v1161_v21 }
 0xf96   :  { %v922_v20 = vadd.f32 0.5, %v921_v19 }
 0xf97   :  { %v924_v28 = vadd.f32 0.5, %v923_v27 }
 0xf98   :  { %v926_v22 = vmul.f32 %v1161_v21, %v922_v20  ;;  %v925_v23 = vmul.f32 %v922_v20, %v840_v4 }
 0xf9a   :  { %928 = vrot.lane.b32.xlu0 %v926_v22, %s1192_s1 }
0x100c   :  { %v929_v24 = vpop.permute.xlu0 %928 }
0x100d   :  { %v931_v25 = vadd.f32 %v929_v24, %v925_v23 }
0x100f   :  { %1162 = vtanh.f32 %v931_v25 }
0x1019   :  { %v1163_v29 = vpop.eup %1162 }
0x101a   :  { %v933_v31 = vmul.f32 %v1163_v29, %v924_v28 }
0x101c   :  { %v942_v30 = vmul.f32 %v940_v61, %v933_v31 }
0x101e   :  { %944 = vrot.lane.b32.xlu0 %v942_v30, %s1192_s1 }
0x1090   :  { %v945_v62 = vpop.permute.xlu0 %944 }
0x1091   :  { %v947_v32 = vsel %vm194_vm0, %v945_v62, 0.0 }
0x1092   :  { %948 = vadd.xlane.f32.xlu1 %v947_v32 }
0x111f   :  { %v949_v37 = vpop.xlane.xlu1 %948 }
0x1120   :  { %v956_v38 = vadd.f32 %v973_v33, %v949_v37 }
0x1122   :  { %958 = vst.msk [vmem:[%s1481_s7] sm:$0xff] %vm957_vm1, %v956_v38 }
0x1123   :  { %963 = vsyncpa [#allocation4], 1 }

</bundles_post_ra>
